<compile_context>
chip_gen: v7x
topology: tpu7x:2x2x1
jax: 0.10.0
libtpu: 0.0.40
codegen_flags: <defaults>
</compile_context>

<pallas_src>
import functools

import jax
import jax.numpy as jnp
from jax.experimental import pallas as pl
from jax.experimental.pallas import tpu as pltpu


# ---------------------------------------------------------------------------
# Fused kernel: hidden MLP + both heads, everything resident in VMEM.
# ---------------------------------------------------------------------------
def _fused_decoder_kernel(n_hidden, *refs):
    """refs = [x, (w_i, b_i) * n_hidden, w_heads, b_heads, out]

    hidden layer i : h = ReLU(h @ w_i + b_i)        (Dropout == identity at inference)
    heads          : out = h @ w_heads + b_heads    (risk/trans columns interleaved)
    """
    x_ref = refs[0]
    o_ref = refs[-1]

    h = x_ref[...]
    idx = 1
    for _ in range(n_hidden):
        w_ref, b_ref = refs[idx], refs[idx + 1]
        idx += 2
        y = jnp.dot(h, w_ref[...], preferred_element_type=jnp.float32)
        h = jnp.maximum(y + b_ref[...], 0.0)          # (1, Fout) bias broadcasts

    wh_ref, bh_ref = refs[idx], refs[idx + 1]
    out = jnp.dot(h, wh_ref[...], preferred_element_type=jnp.float32) + bh_ref[...]
    o_ref[...] = out.astype(o_ref.dtype)


# ---------------------------------------------------------------------------
# Wrapper: single pallas_call, full-array VMEM blocks (no grid at this size).
# ---------------------------------------------------------------------------
def cox_decoder_forward(x, fused_params):
    B = x.shape[0]
    output_f = fused_params["output_f"]
    hidden = fused_params["hidden"]            # list of (w, b as (1, Fout))
    wh = fused_params["w_heads"]               # (last_hidden, 2*output_f), interleaved
    bh = fused_params["b_heads"]               # (1, 2*output_f)

    n_hidden = len(hidden)
    operands = [x]
    for w, b in hidden:
        operands += [w, b]
    operands += [wh, bh]

    vmem = pl.BlockSpec(memory_space=pltpu.MemorySpace.VMEM)
    out2 = pl.pallas_call(
        functools.partial(_fused_decoder_kernel, n_hidden),
        out_shape=jax.ShapeDtypeStruct((B, 2 * output_f), jnp.float32),
        in_specs=[vmem] * len(operands),
        out_specs=vmem,
    )(*operands)

    # Columns are [risk_0, trans_0, risk_1, trans_1, ...]; reshaping (B, 2F) -> (B, F, 2)
    # reproduces torch.cat((risk.unsqueeze(-1), trans.unsqueeze(-1)), dim=-1) for free.
    return out2.reshape(B, output_f, 2)


# ---------------------------------------------------------------------------
# Deterministic parameter construction + head fusion preprocessing
# ---------------------------------------------------------------------------
def make_params(key, latent_f, hidden_f, output_f):
    neurons = [latent_f] + list(hidden_f)
    params = {"hidden": []}
    k = key
    for i in range(len(neurons) - 1):
        k, kw, kb = jax.random.split(k, 3)
        fan_in = neurons[i]
        w = jax.random.normal(kw, (neurons[i], neurons[i + 1]), jnp.float32) / jnp.sqrt(fan_in)
        b = jax.random.normal(kb, (neurons[i + 1],), jnp.float32) * 0.01
        params["hidden"].append((w, b))
    k, kr, kt, kbt = jax.random.split(k, 4)
    last = neurons[-1]
    params["w_risk"] = jax.random.normal(kr, (last, output_f), jnp.float32) / jnp.sqrt(last)
    params["w_tran"] = jax.random.normal(kt, (last, output_f), jnp.float32) / jnp.sqrt(last)
    params["b_tran"] = jax.random.normal(kbt, (output_f,), jnp.float32) * 0.01
    return params


def fuse_params(params, output_f):
    """One-time preprocessing: interleave head weights/biases, make biases 2-D."""
    hidden = [(w, b.reshape(1, -1)) for (w, b) in params["hidden"]]
    last = params["w_risk"].shape[0]
    # column-interleave: [r0, t0, r1, t1, ...]
    w_heads = jnp.stack((params["w_risk"], params["w_tran"]), axis=-1).reshape(last, 2 * output_f)
    b_heads = jnp.stack(
        (jnp.zeros_like(params["b_tran"]), params["b_tran"]), axis=-1
    ).reshape(1, 2 * output_f)
    return {"hidden": hidden, "w_heads": w_heads, "b_heads": b_heads, "output_f": output_f}


# ---------------------------------------------------------------------------
# Reference (plain JAX) for correctness check
# ---------------------------------------------------------------------------
def cox_decoder_ref(x, params):
    h = x
    for (w, b) in params["hidden"]:
        h = jnp.maximum(h @ w + b, 0.0)
    risk = h @ params["w_risk"]
    trans = h @ params["w_tran"] + params["b_tran"]
    return jnp.stack((risk, trans), axis=-1)


if __name__ == "__main__":
    B = 8
    latent_f = 32
    hidden_f = [64, 32]
    output_f = 16

    key = jax.random.PRNGKey(0)
    k_x, k_p = jax.random.split(key)
    x = jax.random.normal(k_x, (B, latent_f), jnp.float32)
    params = make_params(k_p, latent_f, hidden_f, output_f)
    fused = fuse_params(params, output_f)

    out = cox_decoder_forward(x, fused)
    out = jax.block_until_ready(out)

    ref = cox_decoder_ref(x, params)
    assert out.shape == (B, output_f, 2), out.shape
    assert jnp.allclose(out, ref, atol=1e-5, rtol=1e-5), "mismatch vs reference"

    print("KERNEL_OK")
</pallas_src>

<mosaic_0001>
module attributes {stable_mosaic.version = 11 : i64} {
  func.func @_fused_decoder_kernel(%arg0: memref<8x32xf32, #tpu.memory_space<vmem>>, %arg1: memref<32x64xf32, #tpu.memory_space<vmem>>, %arg2: memref<1x64xf32, #tpu.memory_space<vmem>>, %arg3: memref<64x32xf32, #tpu.memory_space<vmem>>, %arg4: memref<1x32xf32, #tpu.memory_space<vmem>>, %arg5: memref<32x32xf32, #tpu.memory_space<vmem>>, %arg6: memref<1x32xf32, #tpu.memory_space<vmem>>, %arg7: memref<8x32xf32, #tpu.memory_space<vmem>>) attributes {dimension_semantics = [], scalar_prefetch = 0 : i64, scratch_operands = 0 : i64, tpu.core_type = #tpu.core_type<tc>} {
    %c0 = arith.constant 0 : index
    %c0_0 = arith.constant 0 : index
    %0 = vector.load %arg0[%c0, %c0_0] : memref<8x32xf32, #tpu.memory_space<vmem>>, vector<8x32xf32>
    %c0_1 = arith.constant 0 : index
    %c0_2 = arith.constant 0 : index
    %1 = vector.load %arg1[%c0_1, %c0_2] : memref<32x64xf32, #tpu.memory_space<vmem>>, vector<32x64xf32>
    %cst = arith.constant dense<0.000000e+00> : vector<8x64xf32>
    %2 = tpu.matmul %0, %1, %cst {dimension_numbers = #tpu.dot_dimension_numbers<[1], [0], [0], [1], [0, 0, 1, 1], [], []>} : vector<8x32xf32>, vector<32x64xf32>, vector<8x64xf32> -> vector<8x64xf32>
    %c0_3 = arith.constant 0 : index
    %c0_4 = arith.constant 0 : index
    %3 = vector.load %arg2[%c0_3, %c0_4] : memref<1x64xf32, #tpu.memory_space<vmem>>, vector<1x64xf32>
    %4 = vector.broadcast %3 : vector<1x64xf32> to vector<8x64xf32>
    %5 = arith.addf %2, %4 : vector<8x64xf32>
    %cst_5 = arith.constant 0.000000e+00 : f32
    %6 = vector.broadcast %cst_5 : f32 to vector<8x64xf32>
    %7 = arith.maximumf %5, %6 : vector<8x64xf32>
    %c0_6 = arith.constant 0 : index
    %c0_7 = arith.constant 0 : index
    %8 = vector.load %arg3[%c0_6, %c0_7] : memref<64x32xf32, #tpu.memory_space<vmem>>, vector<64x32xf32>
    %cst_8 = arith.constant dense<0.000000e+00> : vector<8x32xf32>
    %9 = tpu.matmul %7, %8, %cst_8 {dimension_numbers = #tpu.dot_dimension_numbers<[1], [0], [0], [1], [0, 0, 1, 1], [], []>} : vector<8x64xf32>, vector<64x32xf32>, vector<8x32xf32> -> vector<8x32xf32>
    %c0_9 = arith.constant 0 : index
    %c0_10 = arith.constant 0 : index
    %10 = vector.load %arg4[%c0_9, %c0_10] : memref<1x32xf32, #tpu.memory_space<vmem>>, vector<1x32xf32>
    %11 = vector.broadcast %10 : vector<1x32xf32> to vector<8x32xf32>
    %12 = arith.addf %9, %11 : vector<8x32xf32>
    %cst_11 = arith.constant 0.000000e+00 : f32
    %13 = vector.broadcast %cst_11 : f32 to vector<8x32xf32>
    %14 = arith.maximumf %12, %13 : vector<8x32xf32>
    %c0_12 = arith.constant 0 : index
    %c0_13 = arith.constant 0 : index
    %15 = vector.load %arg5[%c0_12, %c0_13] : memref<32x32xf32, #tpu.memory_space<vmem>>, vector<32x32xf32>
    %cst_14 = arith.constant dense<0.000000e+00> : vector<8x32xf32>
    %16 = tpu.matmul %14, %15, %cst_14 {dimension_numbers = #tpu.dot_dimension_numbers<[1], [0], [0], [1], [0, 0, 1, 1], [], []>} : vector<8x32xf32>, vector<32x32xf32>, vector<8x32xf32> -> vector<8x32xf32>
    %c0_15 = arith.constant 0 : index
    %c0_16 = arith.constant 0 : index
    %17 = vector.load %arg6[%c0_15, %c0_16] : memref<1x32xf32, #tpu.memory_space<vmem>>, vector<1x32xf32>
    %18 = vector.broadcast %17 : vector<1x32xf32> to vector<8x32xf32>
    %19 = arith.addf %16, %18 : vector<8x32xf32>
    %c0_17 = arith.constant 0 : index
    %c0_18 = arith.constant 0 : index
    %20 = vector.load %arg7[%c0_17, %c0_18] : memref<8x32xf32, #tpu.memory_space<vmem>>, vector<8x32xf32>
    tpu.vector_store %arg7[%c0_17, %c0_18], %19 {strides = array<i32>} : memref<8x32xf32, #tpu.memory_space<vmem>>, vector<8x32xf32>,
    return
  }
}

</mosaic_0001>

<bundles_post_ra>
// kernel: tpu_custom_call.1
= control target key start
LH: loop header
LB: loop body
LE: loop exit
PB: predicated region body
PF: predicated region fallthrough
CT: control target
= control target key end

     0   :  { %v421_v3 = vmov 0.0|0.0   ;;  %vm422_vm0 = vmmov 0   ;;  %v423_v6 = vmov 0.0   ;;  %s543_s0 = inlined_call_operand.vmem [shape: f32[8,32], index: 0, kind: input, shape index: {}]   ;;  %s544_s1 = inlined_call_operand.vmem [shape: f32[32,64], index: 1, kind: input, shape index: {}]   ;;  %s545_s2 = inlined_call_operand.vmem [shape: f32[1,64], index: 2, kind: input, shape index: {}]   ;;  %s546_s3 = inlined_call_operand.vmem [shape: f32[64,32], index: 3, kind: input, shape index: {}]   ;;  %s547_s4 = inlined_call_operand.vmem [shape: f32[1,32], index: 4, kind: input, shape index: {}]   ;;  %s548_s5 = inlined_call_operand.vmem [shape: f32[32,32], index: 5, kind: input, shape index: {}]   ;;  %s549_s6 = inlined_call_operand.vmem [shape: f32[1,32], index: 6, kind: input, shape index: {}]   ;;  %s550_s7 = inlined_call_operand.hbm [shape: f32[8,32], index: 7, kind: output, shape index: {}]  }
   0x1   :  { %v28_v0 = vld [vmem:[%s544_s1] sm:$0xff]  ;;  %v29_v1 = vld [vmem:[%s544_s1 + $0x8] sm:$0xff]  ;;  %v30_v2 = vld [vmem:[%s544_s1 + $0x10] sm:$0xff]  ;;  %369 = vmatprep.subr.bf16.mxu0 %v421_v3  ;;  %336 = vmatprep.mubr.msk.f32.mxu0 %vm422_vm0, %v423_v6 }
   0x2   :  { %v370_v4 = vpack.c.bf16 %v29_v1, %v28_v0  ;;  %v31_v5 = vld [vmem:[%s544_s1 + $0x18] sm:$0xff]  ;;  %v114_v7 = vld [vmem:[%s546_s3] sm:$0xff]  ;;  %375 = vmatprep.subr.bf16.mxu1 %v421_v3  ;;  %v115_v8 = vld [vmem:[%s546_s3 + $0x8] sm:$0xff]  ;;  %355 = vmatprep.mubr.msk.f32.mxu1 %vm422_vm0, %v423_v6 }
   0x3   :  { %v116_v9 = vld [vmem:[%s546_s3 + $0x10] sm:$0xff]  ;;  %v117_v10 = vld [vmem:[%s546_s3 + $0x18] sm:$0xff]  ;;  %v373_v11 = vpack.c.bf16 %v31_v5, %v30_v2  ;;  %v376_v12 = vpack.c.bf16 %v115_v8, %v114_v7 }
   0x4   :  { %371 = vmatpush3.bf16.msra.mxu0 %v370_v4 }
   0x5   :  { %372 = vmatprep.subr.bf16.mxu0 %v421_v3 }
   0x6   :  { %12 = vsyncpa [#allocation3], 0  ;;  %377 = vmatpush3.bf16.msra.mxu1 %v376_v12  ;;  %v379_v13 = vpack.c.bf16 %v117_v10, %v116_v9  ;;  %v118_v14 = vld [vmem:[%s546_s3 + $0x20] sm:$0xff]  ;;  %v119_v15 = vld [vmem:[%s546_s3 + $0x28] sm:$0xff]  ;;  %vm39_vm1 = vcmask 261120   ;;  %vm129_vm2 = vcmask 523264  }
   0x7   :  { %378 = vmatprep.subr.bf16.mxu1 %v421_v3  ;;  %v27_v16 = vld [vmem:[%s543_s0] sm:$0xff]  ;;  %v382_v17 = vpack.c.bf16 %v119_v15, %v118_v14  ;;  %v120_v18 = vld [vmem:[%s546_s3 + $0x30] sm:$0xff]  ;;  %v121_v19 = vld [vmem:[%s546_s3 + $0x38] sm:$0xff]  ;;  %s424_s14 = smov [#allocation2]  }
   0x8   :  { %374 = vmatpush3.bf16.msra.mxu0 %v373_v11  ;;  %v385_v20 = vpack.c.bf16 %v121_v19, %v120_v18  ;;  %v204_v21 = vld [vmem:[%s548_s5] sm:$0xff]  ;;  %v205_v22 = vld [vmem:[%s548_s5 + $0x8] sm:$0xff]  ;;  %v206_v29 = vld [vmem:[%s548_s5 + $0x10] sm:$0xff]  ;;  %s295_s15 = sshll.u32 %s424_s14, 4  ;;  %s296_s15 = int_to_ptr.vmem [resolvable:$true] %s295_s15 }
   0x9   :  { %387 = vmatprep.subr.bf16.mxu0 %v421_v3  ;;  %v388_v23 = vpack.c.bf16 %v205_v22, %v204_v21  ;;  %v303_v24 = vld [vmem:[%s545_s2] ss:$0 sm:$0xff]  ;;  %v207_v30 = vld [vmem:[%s548_s5 + $0x18] sm:$0xff]  ;;  %s397_s5 = scalar_lea.vmem %s296_s15, 128  ;;  %p402_p1 = scmp.lt.s32.totalorder %s296_s15, %s296_s15 }
   0xa   :  { %380 = vmatpush3.bf16.msra.mxu1 %v379_v13  ;;  %v391_v31 = vpack.c.bf16 %v207_v30, %v206_v29  ;;  %v305_v32 = vld [vmem:[%s547_s4] ss:$0 sm:$0xff]  ;;  %p398_p0 = scmp.ne.s32.totalorder %s296_s15, %s397_s5  ;;  %p403_p2 = scmp.lt.s32.totalorder %s397_s5, %s397_s5 }
   0xb   :  { %337 = vmatmul.mubr.msk.f32.vlgmr.msra.gmra.mrb[0].mxu0 %vm39_vm1, %v27_v16  ;;  %381 = vmatprep.subr.bf16.mxu1 %v421_v3  ;;  %v307_v37 = vld [vmem:[%s549_s6] ss:$0 sm:$0xff] }
   0xc   :  { %366 = vmatprep.mubr.msk.f32.mxu0 %vm422_vm0, %v423_v6  ;;  %389 = vmatpush3.bf16.msra.mxu0 %v388_v23  ;;  %p404_p3 = por %p403_p2, %p402_p1 }
   0xd   :  { %390 = vmatprep.subr.bf16.mxu0 %v421_v3 }
   0xe   :  { %383 = vmatpush3.bf16.msra.mxu1 %v382_v17  ;;  %p405_p4 = pnand %p404_p3, %p398_p0 }
   0xf   :  { %384 = vmatprep.subr.bf16.mxu1 %v421_v3 }
  0x10   :  { %392 = vmatpush3.bf16.msra.mxu0 %v391_v31 }
  0x12   :  { %386 = vmatpush3.bf16.msra.mxu1 %v385_v20 }
  0xde   :  { %v109_v25 = vpop.f32.mrb[0].mxu0 }
  0xdf   :  { %v110_v26 = vadd.f32 %v303_v24, %v109_v25  ;;  %v338_v27 = vpop.f32.mrb[1].mxu0 }
  0xe1   :  { %v113_v28 = vmax.f32 %v110_v26, 0.0 }
  0xe3   :  { %356 = vmatmul.mubr.msk.f32.vlgmr.msra.gmra.mrb[0].mxu1 %vm129_vm2, %v113_v28 }
 0x1b6   :  { %v199_v33 = vpop.f32.mrb[0].mxu1 }
 0x1b7   :  { %v200_v34 = vadd.f32 %v305_v32, %v199_v33  ;;  %v357_v35 = vpop.f32.mrb[1].mxu1 }
 0x1b9   :  { %v203_v36 = vmax.f32 %v200_v34, 0.0 }
 0x1bb   :  { %367 = vmatmul.mubr.msk.f32.vlgmr.msra.gmra.mrb[2].mxu0 %vm39_vm1, %v203_v36 }
 0x28e   :  { %v284_v38 = vpop.f32.mrb[2].mxu0 }
 0x28f   :  { %v285_v39 = vadd.f32 %v307_v37, %v284_v38  ;;  %v368_v40 = vpop.f32.mrb[3].mxu0 }
 0x291   :  { %288 = vst.msk [vmem:[#allocation2] sm:$0xff] %vm39_vm1, %v285_v39 }
 0x292   :  { %408 = shalt.err (!%p405_p4)
}
 0x293   :  { %s409_s1 = scalar_lea.hbm %s550_s7, 128 }
 0x294   :  { %p410_p5 = scmp.ne.s32.totalorder %s550_s7, %s409_s1  ;;  %p413_p6 = scmp.lt.u32.totalorder %s409_s1, %s550_s7 }
 0x296   :  { %p415_p7 = pnand %p413_p6, %p410_p5 }
 0x298   :  { %418 = shalt.err (!%p415_p7)
}
 0x299   :  { %298 = dma.vmem_to_hbm [thread:$0]  %s296_s15, 128, %s550_s7, [#allocation3]  }
 0x29a   :  { %419 = dma.done.wait [#allocation3], 128  }
 0x29b   :  { %420 = vsyncadd [#allocation3], 4294967168 }
 0x29c   :  { %302 = vsyncpa [#allocation3], 1 }

</bundles_post_ra>
